<compile_context>
chip_gen: v6e
topology: v6e:2x2x1
jax: 0.10.0
libtpu: 0.0.40
codegen_flags: <defaults>
</compile_context>

<pallas_src>
import math
import functools

import jax
import jax.numpy as jnp
from jax.experimental import pallas as pl
from jax.experimental.pallas import tpu as pltpu


# ---------------------------------------------------------------------------
# helpers
# ---------------------------------------------------------------------------

def _round_up(x, m):
    return ((x + m - 1) // m) * m


def _pick_tile(padded_dim, candidates):
    """Largest candidate that evenly divides padded_dim (last always does)."""
    for c in candidates:
        if padded_dim % c == 0:
            return c
    return candidates[-1]


def _apply_act(x, activation):
    if activation == "relu":
        return jnp.maximum(x, 0.0)
    if activation == "tanh":
        return jnp.tanh(x)
    return x  # identity


# ---------------------------------------------------------------------------
# kernels
# ---------------------------------------------------------------------------

def _act_linear_kernel_single_k(x_ref, w_ref, b_ref, o_ref, *, activation):
    """Whole reduction dim in one block: out = act(x) @ w + b, one dot per tile."""
    x = _apply_act(x_ref[...], activation)
    o_ref[...] = (
        jnp.dot(x, w_ref[...], preferred_element_type=jnp.float32) + b_ref[...]
    ).astype(o_ref.dtype)


def _act_linear_kernel_multi_k(x_ref, w_ref, b_ref, o_ref, *, activation):
    """K-tiled reduction: accumulate directly into the f32 resident output tile."""
    k = pl.program_id(2)

    @pl.when(k == 0)
    def _():
        o_ref[...] = jnp.broadcast_to(b_ref[...], o_ref.shape).astype(o_ref.dtype)

    x = _apply_act(x_ref[...], activation)
    o_ref[...] += jnp.dot(x, w_ref[...], preferred_element_type=jnp.float32)


# ---------------------------------------------------------------------------
# fused act + (dropout=identity) + linear layer
# ---------------------------------------------------------------------------

def fused_act_linear(x, w, b, *, activation):
    M, K = x.shape
    Kw, N = w.shape
    assert K == Kw and b.shape == (N,)

    # Pad to TPU-friendly multiples; zero padding is exact (see header comment).
    Mp = _round_up(M, 8)
    Kp = _round_up(K, 128)
    Np = _round_up(N, 128)

    # Large tiles: keep the biggest block that fits the VMEM budget.
    tm = _pick_tile(Mp, (256, 128, 64, 32, 16, 8))
    tn = _pick_tile(Np, (512, 384, 256, 128))
    if Kp <= 2048:
        tk = Kp  # collapse the reduction axis entirely
    else:
        tk = _pick_tile(Kp, (2048, 1024, 768, 512, 384, 256, 128))

    xp = x if (Mp == M and Kp == K) else jnp.pad(x, ((0, Mp - M), (0, Kp - K)))
    wp = w if (Kp == K and Np == N) else jnp.pad(w, ((0, Kp - K), (0, Np - N)))
    bp = (b if Np == N else jnp.pad(b, (0, Np - N))).reshape(1, Np)

    mt, nt, kt = Mp // tm, Np // tn, Kp // tk

    # Explicit VMEM budget with headroom; well under v7x's 64 MiB physical.
    tile_bytes = 4 * (tm * tk + tk * tn + tm * tn + tn)
    vmem_limit = int(min(4 * tile_bytes + (2 << 20), 48 << 20))

    if kt == 1:
        # No K grid axis: no accumulator init/finalize, no acc scratch.
        kernel = functools.partial(_act_linear_kernel_single_k, activation=activation)
        grid = (mt, nt)
        in_specs = [
            pl.BlockSpec((tm, Kp), lambda i, j: (i, 0)),   # x slab
            pl.BlockSpec((Kp, tn), lambda i, j: (0, j)),   # weight slab
            pl.BlockSpec((1, tn), lambda i, j: (0, j)),    # bias
        ]
        out_specs = pl.BlockSpec((tm, tn), lambda i, j: (i, j))
        dim_sem = ("parallel", "parallel")
    else:
        kernel = functools.partial(_act_linear_kernel_multi_k, activation=activation)
        grid = (mt, nt, kt)
        in_specs = [
            pl.BlockSpec((tm, tk), lambda i, j, k: (i, k)),  # x tile
            pl.BlockSpec((tk, tn), lambda i, j, k: (k, j)),  # weight tile
            pl.BlockSpec((1, tn), lambda i, j, k: (0, j)),   # bias tile
        ]
        out_specs = pl.BlockSpec((tm, tn), lambda i, j, k: (i, j))
        dim_sem = ("parallel", "parallel", "arbitrary")

    out = pl.pallas_call(
        kernel,
        out_shape=jax.ShapeDtypeStruct((Mp, Np), jnp.float32),
        grid_spec=pltpu.PrefetchScalarGridSpec(
            num_scalar_prefetch=0,
            grid=grid,
            in_specs=in_specs,
            out_specs=out_specs,
        ),
        compiler_params=pltpu.CompilerParams(
            dimension_semantics=dim_sem,
            vmem_limit_bytes=vmem_limit,
        ),
    )(xp, wp, bp)

    if Mp != M or Np != N:
        out = out[:M, :N]
    return out


# ---------------------------------------------------------------------------
# MiddleNet forward + init
# ---------------------------------------------------------------------------

@functools.partial(jax.jit, static_argnames=("activation",))
def middle_net_forward(H, params, activation="relu"):
    # TODO(synk): nn.Dropout is implemented as identity (inference mode);
    # training-mode dropout would use pltpu.prng_seed / stateful_bernoulli.
    h = H
    for w, b in params:
        h = fused_act_linear(h, w, b, activation=activation)
    return h


def init_middle_net_params(key, hidden_sizes):
    """Matches MiddleNet.init_weights: xavier_uniform(gain=sqrt(2)), bias=0.1."""
    gain = math.sqrt(2.0)  # torch.nn.init.calculate_gain('relu')
    params = []
    for i in range(len(hidden_sizes) - 1):
        key, wkey = jax.random.split(key)
        fan_in, fan_out = hidden_sizes[i], hidden_sizes[i + 1]
        limit = gain * math.sqrt(6.0 / (fan_in + fan_out))
        # Stored as (in, out) so the kernel computes x @ w (== x @ W_torch.T).
        w = jax.random.uniform(
            wkey, (fan_in, fan_out), dtype=jnp.float32, minval=-limit, maxval=limit
        )
        b = jnp.full((fan_out,), 0.1, dtype=jnp.float32)
        params.append((w, b))
    return params


if __name__ == "__main__":
    key = jax.random.PRNGKey(0)
    kh, kp = jax.random.split(key)

    # conf.hidden_sizes / conf.middle_non_linearity / conf.middle_dropout
    batch = 8
    hidden_sizes = [96, 64, 48]
    activation = "relu"

    H = jax.random.normal(kh, (batch, hidden_sizes[0]), dtype=jnp.float32)
    params = init_middle_net_params(kp, hidden_sizes)

    out = middle_net_forward(H, params, activation=activation)
    out = jax.block_until_ready(out)

    # Pure-JAX reference (full-precision matmuls).
    ref = H
    for w, b in params:
        a = _apply_act(ref, activation)
        ref = jnp.dot(a, w, precision=jax.lax.Precision.HIGHEST) + b

    assert out.shape == (batch, hidden_sizes[-1])
    assert jnp.allclose(out, ref, atol=1e-4, rtol=1e-4), "mismatch vs reference"

    print("KERNEL_OK")
</pallas_src>

<mosaic_0001>
module attributes {stable_mosaic.version = 11 : i64} {
  func.func @_act_linear_kernel_single_k(%arg0: i32, %arg1: i32, %arg2: memref<8x128xf32, #tpu.memory_space<vmem>>, %arg3: memref<128x128xf32, #tpu.memory_space<vmem>>, %arg4: memref<1x128xf32, #tpu.memory_space<vmem>>, %arg5: memref<8x128xf32, #tpu.memory_space<vmem>>) attributes {dimension_semantics = [#tpu.dimension_semantics<parallel>, #tpu.dimension_semantics<parallel>], iteration_bounds = array<i64: 1, 1>, scalar_prefetch = 0 : i64, scratch_operands = 0 : i64, tpu.core_type = #tpu.core_type<tc>, window_params = [{transform_indices = @transform_0, window_bounds = array<i64: 8, 128>}, {transform_indices = @transform_1, window_bounds = array<i64: 128, 128>}, {transform_indices = @transform_2, window_bounds = array<i64: 1, 128>}, {transform_indices = @transform_3, window_bounds = array<i64: 8, 128>}]} {
    %c0 = arith.constant 0 : index
    %c0_0 = arith.constant 0 : index
    %0 = vector.load %arg2[%c0, %c0_0] : memref<8x128xf32, #tpu.memory_space<vmem>>, vector<8x128xf32>
    %cst = arith.constant 0.000000e+00 : f32
    %1 = vector.broadcast %cst : f32 to vector<8x128xf32>
    %2 = arith.maximumf %0, %1 : vector<8x128xf32>
    %c0_1 = arith.constant 0 : index
    %c0_2 = arith.constant 0 : index
    %3 = vector.load %arg3[%c0_1, %c0_2] : memref<128x128xf32, #tpu.memory_space<vmem>>, vector<128x128xf32>
    %cst_3 = arith.constant dense<0.000000e+00> : vector<8x128xf32>
    %4 = tpu.matmul %2, %3, %cst_3 {dimension_numbers = #tpu.dot_dimension_numbers<[1], [0], [0], [1], [0, 0, 1, 1], [], []>} : vector<8x128xf32>, vector<128x128xf32>, vector<8x128xf32> -> vector<8x128xf32>
    %c0_4 = arith.constant 0 : index
    %c0_5 = arith.constant 0 : index
    %5 = vector.load %arg4[%c0_4, %c0_5] : memref<1x128xf32, #tpu.memory_space<vmem>>, vector<1x128xf32>
    %6 = vector.broadcast %5 : vector<1x128xf32> to vector<8x128xf32>
    %7 = arith.addf %4, %6 : vector<8x128xf32>
    %c0_6 = arith.constant 0 : index
    %c0_7 = arith.constant 0 : index
    %8 = vector.load %arg5[%c0_6, %c0_7] : memref<8x128xf32, #tpu.memory_space<vmem>>, vector<8x128xf32>
    tpu.vector_store %arg5[%c0_6, %c0_7], %7 {strides = array<i32>} : memref<8x128xf32, #tpu.memory_space<vmem>>, vector<8x128xf32>,
    return
  }
  func.func @transform_0(%arg0: i32, %arg1: i32) -> (i32, i32) {
    %c0_i32 = arith.constant 0 : i32
    %c0_i32_0 = arith.constant 0 : i32
    return %arg0, %c0_i32 : i32, i32
  }
  func.func @transform_1(%arg0: i32, %arg1: i32) -> (i32, i32) {
    %c0_i32 = arith.constant 0 : i32
    %c0_i32_0 = arith.constant 0 : i32
    return %c0_i32, %arg1 : i32, i32
  }
  func.func @transform_2(%arg0: i32, %arg1: i32) -> (i32, i32) {
    %c0_i32 = arith.constant 0 : i32
    %c0_i32_0 = arith.constant 0 : i32
    return %c0_i32, %arg1 : i32, i32
  }
  func.func @transform_3(%arg0: i32, %arg1: i32) -> (i32, i32) {
    %c0_i32 = arith.constant 0 : i32
    return %arg0, %arg1 : i32, i32
  }
}

module attributes {stable_mosaic.version = 11 : i64} {
  func.func @_act_linear_kernel_single_k(%arg0: i32, %arg1: i32, %arg2: memref<8x128xf32, #tpu.memory_space<vmem>>, %arg3: memref<128x128xf32, #tpu.memory_space<vmem>>, %arg4: memref<1x128xf32, #tpu.memory_space<vmem>>, %arg5: memref<8x128xf32, #tpu.memory_space<vmem>>) attributes {dimension_semantics = [#tpu.dimension_semantics<parallel>, #tpu.dimension_semantics<parallel>], iteration_bounds = array<i64: 1, 1>, scalar_prefetch = 0 : i64, scratch_operands = 0 : i64, tpu.core_type = #tpu.core_type<tc>, window_params = [{transform_indices = @transform_0, window_bounds = array<i64: 8, 128>}, {transform_indices = @transform_1, window_bounds = array<i64: 128, 128>}, {transform_indices = @transform_2, window_bounds = array<i64: 1, 128>}, {transform_indices = @transform_3, window_bounds = array<i64: 8, 128>}]} {
    %c0 = arith.constant 0 : index
    %c0_0 = arith.constant 0 : index
    %0 = vector.load %arg2[%c0, %c0_0] : memref<8x128xf32, #tpu.memory_space<vmem>>, vector<8x128xf32>
    %cst = arith.constant 0.000000e+00 : f32
    %1 = vector.broadcast %cst : f32 to vector<8x128xf32>
    %2 = arith.maximumf %0, %1 : vector<8x128xf32>
    %c0_1 = arith.constant 0 : index
    %c0_2 = arith.constant 0 : index
    %3 = vector.load %arg3[%c0_1, %c0_2] : memref<128x128xf32, #tpu.memory_space<vmem>>, vector<128x128xf32>
    %cst_3 = arith.constant dense<0.000000e+00> : vector<8x128xf32>
    %4 = tpu.matmul %2, %3, %cst_3 {dimension_numbers = #tpu.dot_dimension_numbers<[1], [0], [0], [1], [0, 0, 1, 1], [], []>} : vector<8x128xf32>, vector<128x128xf32>, vector<8x128xf32> -> vector<8x128xf32>
    %c0_4 = arith.constant 0 : index
    %c0_5 = arith.constant 0 : index
    %5 = vector.load %arg4[%c0_4, %c0_5] : memref<1x128xf32, #tpu.memory_space<vmem>>, vector<1x128xf32>
    %6 = vector.broadcast %5 : vector<1x128xf32> to vector<8x128xf32>
    %7 = arith.addf %4, %6 : vector<8x128xf32>
    %c0_6 = arith.constant 0 : index
    %c0_7 = arith.constant 0 : index
    %8 = vector.load %arg5[%c0_6, %c0_7] : memref<8x128xf32, #tpu.memory_space<vmem>>, vector<8x128xf32>
    tpu.vector_store %arg5[%c0_6, %c0_7], %7 {strides = array<i32>} : memref<8x128xf32, #tpu.memory_space<vmem>>, vector<8x128xf32>,
    return
  }
  func.func @transform_0(%arg0: i32, %arg1: i32) -> (i32, i32) {
    %c0_i32 = arith.constant 0 : i32
    %c0_i32_0 = arith.constant 0 : i32
    return %arg0, %c0_i32 : i32, i32
  }
  func.func @transform_1(%arg0: i32, %arg1: i32) -> (i32, i32) {
    %c0_i32 = arith.constant 0 : i32
    %c0_i32_0 = arith.constant 0 : i32
    return %c0_i32, %arg1 : i32, i32
  }
  func.func @transform_2(%arg0: i32, %arg1: i32) -> (i32, i32) {
    %c0_i32 = arith.constant 0 : i32
    %c0_i32_0 = arith.constant 0 : i32
    return %c0_i32, %arg1 : i32, i32
  }
  func.func @transform_3(%arg0: i32, %arg1: i32) -> (i32, i32) {
    %c0_i32 = arith.constant 0 : i32
    return %arg0, %arg1 : i32, i32
  }
}

</mosaic_0001>

<bundles_post_ra>
// kernel: middle_net_forward.3
= control target key start
LH: loop header
LB: loop body
LE: loop exit
PB: predicated region body
PF: predicated region fallthrough
CT: control target
= control target key end

     0   :  { %v203_v1 = vmov 0.0   ;;  %vm204_vm0 = vmmov 0   ;;  %s283_s0 = inlined_call_operand.vmem [shape: f32[8,128], index: 0, kind: input, shape index: {}]   ;;  %s284_s1 = inlined_call_operand.vmem [shape: f32[128,128], index: 1, kind: input, shape index: {}]   ;;  %s285_s2 = inlined_call_operand.vmem [shape: f32[1,128], index: 2, kind: input, shape index: {}]   ;;  %s286_s3 = inlined_call_operand.hbm [shape: f32[8,128], index: 3, kind: output, shape index: {}]  }
   0x1   :  { %v32_v0 = vld [vmem:[%s284_s1 + $0x78] sm:$0xff]  ;;  %143 = vmatprep.subr.mxu0 %v203_v1  ;;  %v31_v2 = vld [vmem:[%s284_s1 + $0x70] sm:$0xff]  ;;  %175 = vmatprep.mubr.msk.f32.mxu0 %vm204_vm0, %v203_v1  ;;  %v30_v3 = vld [vmem:[%s284_s1 + $0x68] sm:$0xff] }
   0x2   :  { %144 = vmatpush3.msra.mxu0 %v32_v0  ;;  %v29_v4 = vld [vmem:[%s284_s1 + $0x60] sm:$0xff] }
   0x3   :  { %145 = vmatprep.subr.mxu0 %v203_v1 }
   0x4   :  { %146 = vmatpush3.msra.mxu0 %v31_v2 }
   0x5   :  { %147 = vmatprep.subr.mxu0 %v203_v1 }
   0x6   :  { %148 = vmatpush3.msra.mxu0 %v30_v3 }
   0x7   :  { %8 = vsyncpa [#allocation3], 0  ;;  %149 = vmatprep.subr.mxu0 %v203_v1  ;;  %v28_v5 = vld [vmem:[%s284_s1 + $0x58] sm:$0xff]  ;;  %v27_v6 = vld [vmem:[%s284_s1 + $0x50] sm:$0xff] }
   0x8   :  { %150 = vmatpush3.msra.mxu0 %v29_v4  ;;  %v26_v7 = vld [vmem:[%s284_s1 + $0x48] sm:$0xff]  ;;  %v25_v8 = vld [vmem:[%s284_s1 + $0x40] sm:$0xff]  ;;  %v24_v9 = vld [vmem:[%s284_s1 + $0x38] sm:$0xff] }
   0x9   :  { %151 = vmatprep.subr.mxu0 %v203_v1  ;;  %v23_v10 = vld [vmem:[%s284_s1 + $0x30] sm:$0xff]  ;;  %v22_v11 = vld [vmem:[%s284_s1 + $0x28] sm:$0xff]  ;;  %v21_v12 = vld [vmem:[%s284_s1 + $0x20] sm:$0xff] }
   0xa   :  { %152 = vmatpush3.msra.mxu0 %v28_v5  ;;  %v20_v13 = vld [vmem:[%s284_s1 + $0x18] sm:$0xff]  ;;  %v19_v14 = vld [vmem:[%s284_s1 + $0x10] sm:$0xff]  ;;  %v15_v15 = vld [vmem:[%s283_s0] sm:$0xff]  ;;  %s205_s0 = smov [#allocation2]  }
   0xb   :  { %153 = vmatprep.subr.mxu0 %v203_v1  ;;  %v18_v16 = vld [vmem:[%s284_s1 + $0x8] sm:$0xff]  ;;  %v17_v17 = vld [vmem:[%s284_s1] sm:$0xff]  ;;  %v16_v18 = vmax.f32 %v15_v15, 0.0  ;;  %s117_s21 = sshll.u32 %s205_s0, 4  ;;  %s118_s21 = int_to_ptr.vmem [resolvable:$true] %s117_s21 }
   0xc   :  { %154 = vmatpush3.msra.mxu0 %v27_v6  ;;  %v125_v19 = vld [vmem:[%s285_s2] ss:$0 sm:$0xff]  ;;  %s181_s22 = scalar_lea.vmem %s118_s21, 128  ;;  %p186_p1 = scmp.lt.s32.totalorder %s118_s21, %s118_s21 }
   0xd   :  { %155 = vmatprep.subr.mxu0 %v203_v1  ;;  %p182_p0 = scmp.ne.s32.totalorder %s118_s21, %s181_s22  ;;  %p187_p2 = scmp.lt.s32.totalorder %s181_s22, %s181_s22 }
   0xe   :  { %156 = vmatpush3.msra.mxu0 %v26_v7 }
   0xf   :  { %157 = vmatprep.subr.mxu0 %v203_v1  ;;  %p188_p3 = por %p187_p2, %p186_p1 }
  0x10   :  { %158 = vmatpush3.msra.mxu0 %v25_v8 }
  0x11   :  { %159 = vmatprep.subr.mxu0 %v203_v1  ;;  %p189_p4 = pnand %p188_p3, %p182_p0 }
  0x12   :  { %160 = vmatpush3.msra.mxu0 %v24_v9 }
  0x13   :  { %161 = vmatprep.subr.mxu0 %v203_v1 }
  0x14   :  { %162 = vmatpush3.msra.mxu0 %v23_v10 }
  0x15   :  { %163 = vmatprep.subr.mxu0 %v203_v1 }
  0x16   :  { %164 = vmatpush3.msra.mxu0 %v22_v11 }
  0x17   :  { %165 = vmatprep.subr.mxu0 %v203_v1 }
  0x18   :  { %166 = vmatpush3.msra.mxu0 %v21_v12 }
  0x19   :  { %167 = vmatprep.subr.mxu0 %v203_v1 }
  0x1a   :  { %168 = vmatpush3.msra.mxu0 %v20_v13 }
  0x1b   :  { %169 = vmatprep.subr.mxu0 %v203_v1 }
  0x1c   :  { %170 = vmatpush3.msra.mxu0 %v19_v14 }
  0x1d   :  { %171 = vmatprep.subr.mxu0 %v203_v1 }
  0x1e   :  { %172 = vmatpush3.msra.mxu0 %v18_v16 }
  0x1f   :  { %173 = vmatprep.subr.mxu0 %v203_v1 }
  0x20   :  { %174 = vmatpush3.msra.mxu0 %v17_v17 }
  0x21   :  { %176 = vmatmul.mubr.f32.vlgmr.msra.gmra.mxu0 %v16_v18 }
  0xe1   :  { %v106_v20 = vpop.f32.mrf.mxu0 }
  0xe2   :  { %v107_v21 = vadd.f32 %v125_v19, %v106_v20 }
  0xe3   :  { %v177_v22 = vpop.f32.mrf.mxu0 }
  0xe4   :  { %110 = vst [vmem:[#allocation2] sm:$0xff] %v107_v21 }
  0xe5   :  { %192 = shalt.err (!%p189_p4)
}
  0xe6   :  { %120 = dma.vmem_to_hbm [thread:$0]  %s118_s21, 128, %s286_s3, [#allocation3]  }
  0xe7   :  { %201 = dma.done.wait [#allocation3], 128  }
  0xe8   :  { %202 = vsyncadd [#allocation3], 4294967168 }
  0xe9   :  { %124 = vsyncpa [#allocation3], 1 }

// kernel: middle_net_forward.2
= control target key start
LH: loop header
LB: loop body
LE: loop exit
PB: predicated region body
PF: predicated region fallthrough
CT: control target
= control target key end

     0   :  { %v169_v0 = vmov 0.0   ;;  %vm170_vm0 = vmmov 0   ;;  %s248_s1 = inlined_call_operand.vmem [shape: f32[128,128], index: 1, kind: input, shape index: {}]   ;;  %s249_s0 = inlined_call_operand.vmem [shape: f32[8,128], index: 0, kind: input, shape index: {}]   ;;  %s250_s2 = inlined_call_operand.vmem [shape: f32[1,128], index: 2, kind: input, shape index: {}]   ;;  %s251_s3 = inlined_call_operand.vmem [shape: f32[8,128], index: 3, kind: output, shape index: {}]  }
   0x1   :  { %132 = vmatprep.subr.mxu0 %v169_v0  ;;  %v31_v1 = vld [vmem:[%s248_s1 + $0x78] sm:$0xff]  ;;  %v30_v2 = vld [vmem:[%s248_s1 + $0x70] sm:$0xff]  ;;  %164 = vmatprep.mubr.msk.f32.mxu0 %vm170_vm0, %v169_v0  ;;  %v29_v3 = vld [vmem:[%s248_s1 + $0x68] sm:$0xff] }
   0x2   :  { %133 = vmatpush3.msra.mxu0 %v31_v1  ;;  %v28_v4 = vld [vmem:[%s248_s1 + $0x60] sm:$0xff]  ;;  %v27_v5 = vld [vmem:[%s248_s1 + $0x58] sm:$0xff]  ;;  %v26_v6 = vld [vmem:[%s248_s1 + $0x50] sm:$0xff] }
   0x3   :  { %134 = vmatprep.subr.mxu0 %v169_v0  ;;  %v25_v7 = vld [vmem:[%s248_s1 + $0x48] sm:$0xff]  ;;  %v24_v8 = vld [vmem:[%s248_s1 + $0x40] sm:$0xff]  ;;  %v23_v9 = vld [vmem:[%s248_s1 + $0x38] sm:$0xff] }
   0x4   :  { %135 = vmatpush3.msra.mxu0 %v30_v2  ;;  %v22_v10 = vld [vmem:[%s248_s1 + $0x30] sm:$0xff]  ;;  %v21_v11 = vld [vmem:[%s248_s1 + $0x28] sm:$0xff]  ;;  %v20_v12 = vld [vmem:[%s248_s1 + $0x20] sm:$0xff] }
   0x5   :  { %136 = vmatprep.subr.mxu0 %v169_v0  ;;  %v19_v13 = vld [vmem:[%s248_s1 + $0x18] sm:$0xff]  ;;  %v18_v14 = vld [vmem:[%s248_s1 + $0x10] sm:$0xff]  ;;  %v14_v15 = vld [vmem:[%s249_s0] sm:$0xff] }
   0x6   :  { %137 = vmatpush3.msra.mxu0 %v29_v3  ;;  %v17_v16 = vld [vmem:[%s248_s1 + $0x8] sm:$0xff]  ;;  %v16_v17 = vld [vmem:[%s248_s1] sm:$0xff]  ;;  %v15_v18 = vmax.f32 %v14_v15, 0.0 }
   0x7   :  { %138 = vmatprep.subr.mxu0 %v169_v0  ;;  %v114_v19 = vld [vmem:[%s250_s2] ss:$0 sm:$0xff] }
   0x8   :  { %139 = vmatpush3.msra.mxu0 %v28_v4 }
   0x9   :  { %140 = vmatprep.subr.mxu0 %v169_v0 }
   0xa   :  { %141 = vmatpush3.msra.mxu0 %v27_v5 }
   0xb   :  { %142 = vmatprep.subr.mxu0 %v169_v0 }
   0xc   :  { %143 = vmatpush3.msra.mxu0 %v26_v6 }
   0xd   :  { %144 = vmatprep.subr.mxu0 %v169_v0 }
   0xe   :  { %145 = vmatpush3.msra.mxu0 %v25_v7 }
   0xf   :  { %146 = vmatprep.subr.mxu0 %v169_v0 }
  0x10   :  { %147 = vmatpush3.msra.mxu0 %v24_v8 }
  0x11   :  { %148 = vmatprep.subr.mxu0 %v169_v0 }
  0x12   :  { %149 = vmatpush3.msra.mxu0 %v23_v9 }
  0x13   :  { %150 = vmatprep.subr.mxu0 %v169_v0 }
  0x14   :  { %151 = vmatpush3.msra.mxu0 %v22_v10 }
  0x15   :  { %152 = vmatprep.subr.mxu0 %v169_v0 }
  0x16   :  { %153 = vmatpush3.msra.mxu0 %v21_v11 }
  0x17   :  { %154 = vmatprep.subr.mxu0 %v169_v0 }
  0x18   :  { %155 = vmatpush3.msra.mxu0 %v20_v12 }
  0x19   :  { %156 = vmatprep.subr.mxu0 %v169_v0 }
  0x1a   :  { %157 = vmatpush3.msra.mxu0 %v19_v13 }
  0x1b   :  { %158 = vmatprep.subr.mxu0 %v169_v0 }
  0x1c   :  { %159 = vmatpush3.msra.mxu0 %v18_v14 }
  0x1d   :  { %160 = vmatprep.subr.mxu0 %v169_v0 }
  0x1e   :  { %161 = vmatpush3.msra.mxu0 %v17_v16 }
  0x1f   :  { %162 = vmatprep.subr.mxu0 %v169_v0 }
  0x20   :  { %163 = vmatpush3.msra.mxu0 %v16_v17 }
  0x21   :  { %165 = vmatmul.mubr.f32.vlgmr.msra.gmra.mxu0 %v15_v18 }
  0xe1   :  { %v105_v20 = vpop.f32.mrf.mxu0 }
  0xe2   :  { %v106_v21 = vadd.f32 %v114_v19, %v105_v20 }
  0xe3   :  { %v166_v22 = vpop.f32.mrf.mxu0 }
  0xe4   :  { %109 = vst [vmem:[%s251_s3] sm:$0xff] %v106_v21 }

</bundles_post_ra>
